<compile_context>
chip_gen: v7x
topology: tpu7x:2x2x1
jax: 0.10.0
libtpu: 0.0.40
codegen_flags: <defaults>
</compile_context>

<pallas_src>
import functools

import numpy as np
import jax
import jax.numpy as jnp
from jax import lax
from jax.experimental import pallas as pl
from jax.experimental.pallas import tpu as pltpu

# ----------------------------------------------------------------------------
# Deterministic "CharTextTransform" equivalent (librispeech-style char vocab).
# ----------------------------------------------------------------------------
BLANK_TOKEN = "<blank>"
_TOKENS = [
    BLANK_TOKEN, "|", "e", "t", "a", "o", "n", "i", "h", "s", "r", "d", "l",
    "u", "m", "w", "c", "f", "g", "y", "p", "b", "v", "k", "'", "x", "j",
    "q", "z",
]
INDEX_MAP = {i: t for i, t in enumerate(_TOKENS)}
CHAR_MAP = {t: i for i, t in enumerate(_TOKENS)}
VOCAB_SIZE = len(_TOKENS)  # 29

_TILE_CAP = 4096   # max timesteps per grid step (lane/HBM-traffic vs step-overhead sweet spot)
_CHUNK_T = 128     # timesteps per in-kernel chunk (bounds vreg pressure)


def _round_up(x: int, m: int) -> int:
    return ((x + m - 1) // m) * m


def _tile_policy(T: int, cap: int):
    """Pick (tile, T_pad, n_steps).

    Short/medium T -> single grid step with tile = round_up(T, 128) (no wasted DMA).
    Long T -> n_steps = ceil(T / cap) >= 2 steps of near-equal size so the "parallel"
    grid axis shards across both TensorCores on v7x and padding waste stays ~1 tile max.
    """
    cap = max(128, _round_up(int(cap), 128))     # validate caller-supplied tile_cap
    T = int(T)
    if T <= cap:
        tile = _round_up(max(T, 1), 128)
        n_steps = 1
    else:
        n_steps = -(-T // cap)
        tile = _round_up(-(-T // n_steps), 128)
    T_pad = n_steps * tile
    return tile, T_pad, n_steps


# ----------------------------------------------------------------------------
# Kernels.  Blocks are (TILE_T, V) in the NATIVE emission layout (time on sublanes,
# vocab on lanes); reductions run over the lane axis (XLU), argmax stays in the
# input dtype, and the body walks the tile in 128-row chunks to bound vreg use.
# ----------------------------------------------------------------------------
def _argmax_over_vocab(x, v):
    """Lowest-index argmax over the last axis; NaN rows resolve to token 0 (blank)."""
    xv = jnp.where(x == x, x, jnp.array(-jnp.inf, x.dtype))   # NaN -> -inf (safe argmax)
    m = jnp.max(xv, axis=-1, keepdims=True)
    col = lax.broadcasted_iota(jnp.int32, x.shape, 1)
    idx = jnp.where(xv == m, col, jnp.int32(v))
    return jnp.min(idx, axis=-1, keepdims=True)               # (CH, 1) int32


def _best_kernel(em_ref, best_ref):
    """Decode-only: per-timestep argmax over vocab from raw logits."""
    tile, v = em_ref.shape
    n_chunks = tile // _CHUNK_T

    @pl.loop(0, n_chunks)
    def _(c):
        off = pl.multiple_of(c * _CHUNK_T, _CHUNK_T)
        x = em_ref[pl.ds(off, _CHUNK_T), :]                   # native dtype (bf16 ok)
        best_ref[pl.ds(off, _CHUNK_T), :] = _argmax_over_vocab(x, v)


def _score_kernel(em_ref, logp_ref, best_ref):
    """Full variant: log-softmax over vocab + per-timestep best token."""
    tile, v = em_ref.shape
    n_chunks = tile // _CHUNK_T

    @pl.loop(0, n_chunks)
    def _(c):
        off = pl.multiple_of(c * _CHUNK_T, _CHUNK_T)
        x = em_ref[pl.ds(off, _CHUNK_T), :]
        xf = x.astype(jnp.float32)                            # upcast only for exp/log (EUP)
        m = jnp.max(xf, axis=-1, keepdims=True)
        lse = m + jnp.log(jnp.sum(jnp.exp(xf - m), axis=-1, keepdims=True))
        logp_ref[pl.ds(off, _CHUNK_T), :] = (xf - lse).astype(logp_ref.dtype)
        # argmax from raw logits (invariant under the monotone shift), decoupled from EUP.
        best_ref[pl.ds(off, _CHUNK_T), :] = _argmax_over_vocab(x, v)


# ----------------------------------------------------------------------------
# Wrappers (fully jitted: pad + pallas_call + slice fuse into one dispatch).
# ----------------------------------------------------------------------------
def _pad_time(emission, T_pad):
    T = emission.shape[0]
    if T_pad != T:
        # Padded rows are all-zero -> decode to token 0 (blank); they are sliced off below.
        emission = jnp.pad(emission, ((0, T_pad - T), (0, 0)))
    return emission


@functools.partial(jax.jit, static_argnames=("tile_cap",))
def ctc_best_path(emission: jnp.ndarray, tile_cap: int = _TILE_CAP) -> jnp.ndarray:
    """emission: (T, V) logits (f32 or bf16) -> best token id per timestep, (T,) int32."""
    T, V = emission.shape
    tile, T_pad, n_steps = _tile_policy(T, tile_cap)
    em = _pad_time(emission, T_pad)
    best = pl.pallas_call(
        _best_kernel,
        out_shape=jax.ShapeDtypeStruct((T_pad, 1), jnp.int32),
        grid=(n_steps,),
        in_specs=[pl.BlockSpec((tile, V), lambda i: (i, 0))],
        out_specs=pl.BlockSpec((tile, 1), lambda i: (i, 0)),
        compiler_params=pltpu.CompilerParams(dimension_semantics=("parallel",)),
    )(em)
    return best[:T, 0]


@functools.partial(jax.jit, static_argnames=("tile_cap",))
def ctc_score(emission: jnp.ndarray, tile_cap: int = _TILE_CAP):
    """emission: (T, V) logits -> (log_probs (T, V) in input dtype, best tokens (T,) int32)."""
    T, V = emission.shape
    tile, T_pad, n_steps = _tile_policy(T, tile_cap)
    em = _pad_time(emission, T_pad)
    logp, best = pl.pallas_call(
        _score_kernel,
        out_shape=(
            jax.ShapeDtypeStruct((T_pad, V), emission.dtype),  # bf16 in -> bf16 out (halves HBM write)
            jax.ShapeDtypeStruct((T_pad, 1), jnp.int32),
        ),
        grid=(n_steps,),
        in_specs=[pl.BlockSpec((tile, V), lambda i: (i, 0))],
        out_specs=(
            pl.BlockSpec((tile, V), lambda i: (i, 0)),
            pl.BlockSpec((tile, 1), lambda i: (i, 0)),
        ),
        compiler_params=pltpu.CompilerParams(dimension_semantics=("parallel",)),
    )(em)
    return logp[:T], best[:T, 0]


@functools.partial(jax.jit, static_argnames=("blank_id", "tile_cap"))
def ctc_collapse_prep(emission: jnp.ndarray, blank_id: int = 0, tile_cap: int = _TILE_CAP):
    """Single fused dispatch: best path + CTC collapse mask (drop repeats, drop blanks)."""
    best = ctc_best_path(emission, tile_cap=tile_cap)
    prev = jnp.concatenate([jnp.full((1,), -1, dtype=jnp.int32), best[:-1]])
    keep = (best != prev) & (best != blank_id)
    return best, keep


# ----------------------------------------------------------------------------
# Decoder wrapper mirroring BeamSearchDecoder.forward semantics.
# ----------------------------------------------------------------------------
class BeamSearchDecoder:
    def __init__(self, blank: str = BLANK_TOKEN, beam_size: int = 25):
        self.blank = CHAR_MAP[blank]
        self.beam_size = beam_size
        self.vocab = [INDEX_MAP[i] for i in range(len(INDEX_MAP))]
        # TODO(synk): lexicon + KenLM ('librispeech-4-gram') constrained beam search is
        # host-side string/hash-table bookkeeping with no Pallas equivalent; the kernel
        # implements the emission scoring / CTC best-path portion only.

    def forward(self, emission: jnp.ndarray) -> str:
        # emission: (T, V) logits, analogous to the pre-unsqueeze torch tensor.
        best, keep = ctc_collapse_prep(jnp.asarray(emission), blank_id=self.blank)
        best_np, keep_np = jax.device_get((best, keep))       # single host sync
        kept = np.asarray(best_np)[np.asarray(keep_np)]       # vectorized; short result
        tokens_str = "".join(INDEX_MAP[int(t)] for t in kept.tolist())
        transcript = " ".join(tokens_str.split("|"))
        return transcript

    __call__ = forward


# ----------------------------------------------------------------------------
# Demo
# ----------------------------------------------------------------------------
if __name__ == "__main__":
    key = jax.random.PRNGKey(0)
    T = 600  # exercises the single-step round_up(T,128)=640 path
    emission = jax.random.normal(key, (T, VOCAB_SIZE), dtype=jnp.float32)
    ref_best = jnp.argmax(emission, axis=-1).astype(jnp.int32)

    # Decode-only kernel (single grid step).
    best = jax.block_until_ready(ctc_best_path(emission))
    assert best.shape == (T,)
    assert bool(jnp.all(best == ref_best)), "best-path mismatch"

    # Multi-step grid (forces 3 parallel steps of tile=256) must agree.
    best_ms = jax.block_until_ready(ctc_best_path(emission, tile_cap=256))
    assert bool(jnp.all(best_ms == ref_best)), "best-path mismatch (multi-step grid)"

    # bf16 input path (native-dtype argmax).
    em_bf16 = emission.astype(jnp.bfloat16)
    best_bf = jax.block_until_ready(ctc_best_path(em_bf16))
    ref_best_bf = jnp.argmax(em_bf16, axis=-1).astype(jnp.int32)
    assert bool(jnp.all(best_bf == ref_best_bf)), "best-path mismatch (bf16)"

    # Full scoring kernel (log-probs + best) vs reference log-softmax.
    logp, best2 = ctc_score(emission)
    jax.block_until_ready(logp)
    jax.block_until_ready(best2)
    ref_logp = jax.nn.log_softmax(emission, axis=-1)
    assert bool(jnp.allclose(logp, ref_logp, atol=1e-5)), "log-softmax mismatch"
    assert bool(jnp.all(best2 == ref_best)), "best-path mismatch (full kernel)"

    decoder = BeamSearchDecoder()
    transcript = decoder(emission)  # exercises the fused forward path
    assert isinstance(transcript, str)
    print("KERNEL_OK")
</pallas_src>

<mosaic_0001>
module attributes {stable_mosaic.version = 11 : i64} {
  func.func @_best_kernel(%arg0: i32, %arg1: memref<640x29xf32, #tpu.memory_space<vmem>>, %arg2: memref<640x1xi32, #tpu.memory_space<vmem>>) attributes {dimension_semantics = [#tpu.dimension_semantics<parallel>], iteration_bounds = array<i64: 1>, scalar_prefetch = 0 : i64, scratch_operands = 0 : i64, tpu.core_type = #tpu.core_type<tc>, window_params = [{transform_indices = @transform_0, window_bounds = array<i64: 640, 29>}, {transform_indices = @transform_1, window_bounds = array<i64: 640, 1>}]} {
    %c0_i32 = arith.constant 0 : i32
    %c5_i32 = arith.constant 5 : i32
    %0 = arith.addi %c0_i32, %c5_i32 : i32
    %c1_i32 = arith.constant 1 : i32
    scf.for %arg3 = %c0_i32 to %0 step %c1_i32  : i32 {
      %c1_i32_1 = arith.constant 1 : i32
      %1 = arith.muli %arg3, %c1_i32_1 : i32
      %c0_i32_2 = arith.constant 0 : i32
      %2 = arith.addi %c0_i32_2, %1 : i32
      %c128_i32 = arith.constant 128 : i32
      %3 = arith.muli %2, %c128_i32 : i32
      %4 = tpu.assume_multiple %3, 128 : i32
      %5 = arith.index_cast %4 : i32 to index
      %c0 = arith.constant 0 : index
      %6 = vector.load %arg1[%5, %c0] : memref<640x29xf32, #tpu.memory_space<vmem>>, vector<128x29xf32>
      %7 = arith.cmpf oeq, %6, %6 : vector<128x29xf32>
      %cst = arith.constant 0xFF800000 : f32
      %8 = vector.broadcast %cst : f32 to vector<128x29xf32>
      %9 = arith.select %7, %6, %8 : vector<128x29xi1>, vector<128x29xf32>
      %cst_3 = arith.constant dense<0xFF800000> : vector<128xf32>
      %10 = vector.multi_reduction <maximumf>, %9, %cst_3 [1] : vector<128x29xf32> to vector<128xf32>
      %11 = vector.shape_cast %10 : vector<128xf32> to vector<128x1xf32>
      %12 = tpu.iota {dimensions = array<i32: 1>} : vector<128x29xi32>
      %13 = vector.broadcast %11 : vector<128x1xf32> to vector<128x29xf32>
      %14 = arith.cmpf oeq, %9, %13 : vector<128x29xf32>
      %c29_i32 = arith.constant 29 : i32
      %15 = vector.broadcast %c29_i32 : i32 to vector<128x29xi32>
      %16 = arith.select %14, %12, %15 : vector<128x29xi1>, vector<128x29xi32>
      %cst_4 = arith.constant dense<2147483647> : vector<128xi32>
      %17 = vector.multi_reduction <minsi>, %16, %cst_4 [1] : vector<128x29xi32> to vector<128xi32>
      %18 = vector.shape_cast %17 : vector<128xi32> to vector<128x1xi32>
      %19 = arith.index_cast %4 : i32 to index
      %c0_5 = arith.constant 0 : index
      %20 = vector.load %arg2[%19, %c0_5] : memref<640x1xi32, #tpu.memory_space<vmem>>, vector<128x1xi32>
      tpu.vector_store %arg2[%19, %c0_5], %18 {strides = array<i32>} : memref<640x1xi32, #tpu.memory_space<vmem>>, vector<128x1xi32>,
    }
    %c5_i32_0 = arith.constant 5 : i32
    return
  }
  func.func @transform_0(%arg0: i32) -> (i32, i32) {
    %c0_i32 = arith.constant 0 : i32
    %c0_i32_0 = arith.constant 0 : i32
    return %arg0, %c0_i32 : i32, i32
  }
  func.func @transform_1(%arg0: i32) -> (i32, i32) {
    %c0_i32 = arith.constant 0 : i32
    %c0_i32_0 = arith.constant 0 : i32
    return %arg0, %c0_i32 : i32, i32
  }
}

</mosaic_0001>

<bundles_post_ra>
// kernel: ctc_best_path.1
= control target key start
LH: loop header
LB: loop body
LE: loop exit
PB: predicated region body
PF: predicated region fallthrough
CT: control target
= control target key end

     0   :  { %s445_s6 = smov 0   ;;  %s822_s0 = inlined_call_operand.vmem [shape: f32[640,29], index: 0, kind: input, shape index: {}]   ;;  %s823_s1 = inlined_call_operand.vmem [shape: s32[640,1], index: 1, kind: output, shape index: {}]  }
   0x1 LB: > { %s418_s7 = sshll.u32 %s433_s6, 7  ;;  %vm64_vm0 = vcmask 236544   ;;  %v113_v48 = vlaneseq  ;;  %s13_s6 = sadd.s32 1, %s433_s6   ;;  %s433_s6 = sphi %s445_s6, %s13_s6  }
   0x2   : > { %s456_s10 = scalar_lea.vmem %s822_s0, %s418_s7  ;;  %s772_s13 = scalar_lea.vmem %s823_s1, %s418_s7 }
   0x3   : > { %v16_v0 = vld [vmem:[%s456_s10] sm:$0xff]  ;;  %v18_v1 = vld [vmem:[%s456_s10 + $0x10] sm:$0xff]  ;;  %v17_v2 = vld [vmem:[%s456_s10 + $0x8] sm:$0xff]  ;;  %v538_v49 = vand.u32 127, %v113_v48  ;;  %p10_p0 = scmp.ge.s32.totalorder %s13_s6, 5  }
   0x4   : > { %vm32_vm1 = vcmp.eq.f32.partialorder %v16_v0, %v16_v0  ;;  %vm34_vm2 = vcmp.eq.f32.partialorder %v18_v1, %v18_v1  ;;  %vm33_vm3 = vcmp.eq.f32.partialorder %v17_v2, %v17_v2  ;;  %v19_v3 = vld [vmem:[%s456_s10 + $0x18] sm:$0xff]  ;;  %v20_v4 = vld [vmem:[%s456_s10 + $0x20] sm:$0xff]  ;;  %v21_v5 = vld [vmem:[%s456_s10 + $0x28] sm:$0xff] }
   0x5   : > { %v464_v6 = vsel %vm32_vm1, %v16_v0, -inf  ;;  %v466_v7 = vsel %vm34_vm2, %v18_v1, -inf  ;;  %v468_v8 = vsel %vm33_vm3, %v17_v2, -inf  ;;  %vm35_vm4 = vcmp.eq.f32.partialorder %v19_v3, %v19_v3  ;;  %v22_v12 = vld [vmem:[%s456_s10 + $0x30] sm:$0xff]  ;;  %v23_v13 = vld [vmem:[%s456_s10 + $0x38] sm:$0xff]  ;;  %v24_v18 = vld [vmem:[%s456_s10 + $0x40] sm:$0xff] }
   0x6   : > { %v65_v9 = vsel %vm64_vm0, %v464_v6, -inf  ;;  %v71_v10 = vsel %vm64_vm0, %v466_v7, -inf  ;;  %v474_v11 = vsel %vm35_vm4, %v19_v3, -inf  ;;  %vm36_vm5 = vcmp.eq.f32.partialorder %v20_v4, %v20_v4  ;;  %v25_v19 = vld [vmem:[%s456_s10 + $0x48] sm:$0xff]  ;;  %v26_v24 = vld [vmem:[%s456_s10 + $0x50] sm:$0xff]  ;;  %v27_v25 = vld [vmem:[%s456_s10 + $0x58] sm:$0xff] }
   0x7   : > { %66 = vmax.xlane.f32.xlu0 %v65_v9  ;;  %72 = vmax.xlane.f32.xlu1 %v71_v10  ;;  %vm37_vm6 = vcmp.eq.f32.partialorder %v21_v5, %v21_v5  ;;  %v68_v14 = vsel %vm64_vm0, %v468_v8, -inf  ;;  %v74_v15 = vsel %vm64_vm0, %v474_v11, -inf  ;;  %v482_v16 = vsel %vm36_vm5, %v20_v4, -inf  ;;  %v28_v30 = vld [vmem:[%s456_s10 + $0x60] sm:$0xff]  ;;  %v29_v31 = vld [vmem:[%s456_s10 + $0x68] sm:$0xff]  ;;  %v30_v36 = vld [vmem:[%s456_s10 + $0x70] sm:$0xff] }
   0x8   : > { %v484_v17 = vsel %vm37_vm6, %v21_v5, -inf  ;;  %vm38_vm7 = vcmp.eq.f32.partialorder %v22_v12, %v22_v12  ;;  %vm39_vm8 = vcmp.eq.f32.partialorder %v23_v13, %v23_v13  ;;  %v77_v20 = vsel %vm64_vm0, %v482_v16, -inf  ;;  %v31_v37 = vld [vmem:[%s456_s10 + $0x78] sm:$0xff] }
   0x9   : > { %v80_v21 = vsel %vm64_vm0, %v484_v17, -inf  ;;  %v492_v22 = vsel %vm38_vm7, %v22_v12, -inf  ;;  %v494_v23 = vsel %vm39_vm8, %v23_v13, -inf  ;;  %vm40_vm9 = vcmp.eq.f32.partialorder %v24_v18, %v24_v18 }
   0xa   : > { %vm41_vm10 = vcmp.eq.f32.partialorder %v25_v19, %v25_v19  ;;  %v83_v26 = vsel %vm64_vm0, %v492_v22, -inf  ;;  %v86_v27 = vsel %vm64_vm0, %v494_v23, -inf  ;;  %v502_v28 = vsel %vm40_vm9, %v24_v18, -inf }
   0xb   : > { %69 = vmax.xlane.f32.xlu0 %v68_v14  ;;  %75 = vmax.xlane.f32.xlu1 %v74_v15  ;;  %v504_v29 = vsel %vm41_vm10, %v25_v19, -inf  ;;  %vm42_vm11 = vcmp.eq.f32.partialorder %v26_v24, %v26_v24  ;;  %vm43_vm12 = vcmp.eq.f32.partialorder %v27_v25, %v27_v25  ;;  %v89_v32 = vsel %vm64_vm0, %v502_v28, -inf }
   0xc   : > { %v92_v33 = vsel %vm64_vm0, %v504_v29, -inf  ;;  %v512_v34 = vsel %vm42_vm11, %v26_v24, -inf  ;;  %v514_v35 = vsel %vm43_vm12, %v27_v25, -inf  ;;  %vm44_vm13 = vcmp.eq.f32.partialorder %v28_v30, %v28_v30 }
   0xd   : > { %vm45_vm14 = vcmp.eq.f32.partialorder %v29_v31, %v29_v31  ;;  %v95_v38 = vsel %vm64_vm0, %v512_v34, -inf  ;;  %v98_v39 = vsel %vm64_vm0, %v514_v35, -inf  ;;  %v522_v40 = vsel %vm44_vm13, %v28_v30, -inf }
   0xe   : > { %v524_v41 = vsel %vm45_vm14, %v29_v31, -inf  ;;  %vm46_vm15 = vcmp.eq.f32.partialorder %v30_v36, %v30_v36  ;;  %vm47_vm1 = vcmp.eq.f32.partialorder %v31_v37, %v31_v37  ;;  %v101_v42 = vsel %vm64_vm0, %v522_v40, -inf }
   0xf   : > { %78 = vmax.xlane.f32.xlu0 %v77_v20  ;;  %81 = vmax.xlane.f32.xlu1 %v80_v21  ;;  %v104_v43 = vsel %vm64_vm0, %v524_v41, -inf  ;;  %v530_v44 = vsel %vm46_vm15, %v30_v36, -inf  ;;  %v532_v45 = vsel %vm47_vm1, %v31_v37, -inf }
  0x10   : > { %v107_v46 = vsel %vm64_vm0, %v530_v44, -inf  ;;  %v110_v47 = vsel %vm64_vm0, %v532_v45, -inf }
  0x13   : > { %84 = vmax.xlane.f32.xlu0 %v83_v26  ;;  %87 = vmax.xlane.f32.xlu1 %v86_v27 }
  0x17   : > { %90 = vmax.xlane.f32.xlu0 %v89_v32  ;;  %93 = vmax.xlane.f32.xlu1 %v92_v33 }
  0x1b   : > { %96 = vmax.xlane.f32.xlu0 %v95_v38  ;;  %99 = vmax.xlane.f32.xlu1 %v98_v39 }
  0x1f   : > { %102 = vmax.xlane.f32.xlu0 %v101_v42  ;;  %105 = vmax.xlane.f32.xlu1 %v104_v43 }
  0x23   : > { %108 = vmax.xlane.f32.xlu0 %v107_v46  ;;  %111 = vmax.xlane.f32.xlu1 %v110_v47 }
  0x94   : > { %v67_v50 = vpop.xlane.xlu0 %66  ;;  %v73_v51 = vpop.xlane.xlu1 %72 }
  0x95   : > { %vm115_vm2 = vcmp.eq.f32.partialorder %v464_v6, %v67_v50  ;;  %vm117_vm3 = vcmp.eq.f32.partialorder %v466_v7, %v73_v51 }
  0x96   : > { %v131_v52 = vsel %vm115_vm2, %v538_v49, 29  ;;  %v133_v53 = vsel %vm117_vm3, %v538_v49, 29 }
  0x97   : > { %v545_v54 = vsel %vm64_vm0, %v131_v52, 2147483647  ;;  %v548_v55 = vsel %vm64_vm0, %v133_v53, 2147483647 }
  0x98   : > { %v70_v56 = vpop.xlane.xlu0 %69  ;;  %v76_v57 = vpop.xlane.xlu1 %75  ;;  %v149_v58 = vshra.s32 %v545_v54, 16  ;;  %v179_v59 = vshra.s32 %v548_v55, 16 }
  0x99   : > { %vm116_vm4 = vcmp.eq.f32.partialorder %v468_v8, %v70_v56  ;;  %vm118_vm5 = vcmp.eq.f32.partialorder %v474_v11, %v76_v57 }
  0x9a   : > { %v132_v60 = vsel %vm116_vm4, %v538_v49, 29  ;;  %v134_v61 = vsel %vm118_vm5, %v538_v49, 29  ;;  %v556_v62 = vcvt.s32.f32 %v149_v58  ;;  %v565_v3 = vcvt.s32.f32 %v179_v59 }
  0x9b   : > { %v559_v63 = vsel %vm64_vm0, %v132_v60, 2147483647  ;;  %v562_v0 = vsel %vm64_vm0, %v134_v61, 2147483647 }
  0x9c   : > { %152 = vmin.xlane.f32.xlu0 %v556_v62  ;;  %v79_v1 = vpop.xlane.xlu0 %78  ;;  %v82_v2 = vpop.xlane.xlu1 %81  ;;  %v164_v4 = vshra.s32 %v559_v63, 16  ;;  %v194_v5 = vshra.s32 %v562_v0, 16 }
  0x9d   : > { %vm119_vm6 = vcmp.eq.f32.partialorder %v482_v16, %v79_v1  ;;  %vm120_vm7 = vcmp.eq.f32.partialorder %v484_v17, %v82_v2 }
  0x9e   : > { %v135_v6 = vsel %vm119_vm6, %v538_v49, 29  ;;  %v136_v7 = vsel %vm120_vm7, %v538_v49, 29  ;;  %v573_v8 = vcvt.s32.f32 %v164_v4  ;;  %v583_v13 = vcvt.s32.f32 %v194_v5 }
  0x9f   : > { %v576_v9 = vsel %vm64_vm0, %v135_v6, 2147483647  ;;  %v579_v10 = vsel %vm64_vm0, %v136_v7, 2147483647 }
  0xa0   : > { %182 = vmin.xlane.f32.xlu0 %v565_v3  ;;  %167 = vmin.xlane.f32.xlu1 %v573_v8  ;;  %v85_v11 = vpop.xlane.xlu0 %84  ;;  %v88_v12 = vpop.xlane.xlu1 %87  ;;  %v209_v14 = vshra.s32 %v576_v9, 16  ;;  %v224_v15 = vshra.s32 %v579_v10, 16 }
  0xa1   : > { %vm121_vm8 = vcmp.eq.f32.partialorder %v492_v22, %v85_v11  ;;  %vm122_vm9 = vcmp.eq.f32.partialorder %v494_v23, %v88_v12  ;;  %v148_v11 = vand.u32 65535, %v545_v54  ;;  %v193_v54 = vand.u32 65535, %v562_v0 }
  0xa2   : > { %v137_v16 = vsel %vm121_vm8, %v538_v49, 29  ;;  %v138_v17 = vsel %vm122_vm9, %v538_v49, 29  ;;  %v591_v18 = vcvt.s32.f32 %v209_v14  ;;  %v601_v24 = vcvt.s32.f32 %v224_v15 }
  0xa3   : > { %v594_v19 = vsel %vm64_vm0, %v137_v16, 2147483647  ;;  %v597_v20 = vsel %vm64_vm0, %v138_v17, 2147483647  ;;  %v150_v14 = vcvt.s32.f32 %v148_v11  ;;  %v163_v15 = vand.u32 65535, %v559_v63 }
  0xa4   : > { %197 = vmin.xlane.f32.xlu1 %v583_v13  ;;  %212 = vmin.xlane.f32.xlu0 %v591_v18  ;;  %v91_v21 = vpop.xlane.xlu0 %90  ;;  %v94_v22 = vpop.xlane.xlu1 %93  ;;  %v239_v23 = vshra.s32 %v594_v19, 16  ;;  %v254_v25 = vshra.s32 %v597_v20, 16  ;;  %v178_v16 = vand.u32 65535, %v548_v55  ;;  %v223_v0 = vand.u32 65535, %v579_v10 }
  0xa5   : > { %vm123_vm10 = vcmp.eq.f32.partialorder %v502_v28, %v91_v21  ;;  %vm124_vm11 = vcmp.eq.f32.partialorder %v504_v29, %v94_v22  ;;  %v253_v10 = vand.u32 65535, %v597_v20 }
  0xa6   : > { %v139_v26 = vsel %vm123_vm10, %v538_v49, 29  ;;  %v140_v27 = vsel %vm124_vm11, %v538_v49, 29  ;;  %v609_v30 = vcvt.s32.f32 %v239_v23  ;;  %v619_v36 = vcvt.s32.f32 %v254_v25 }
  0xa7   : > { %v612_v31 = vsel %vm64_vm0, %v139_v26, 2147483647  ;;  %v615_v32 = vsel %vm64_vm0, %v140_v27, 2147483647  ;;  %v165_v23 = vcvt.s32.f32 %v163_v15  ;;  %v180_v25 = vcvt.s32.f32 %v178_v16 }
  0xa8   : > { %227 = vmin.xlane.f32.xlu1 %v601_v24  ;;  %242 = vmin.xlane.f32.xlu0 %v609_v30  ;;  %v97_v33 = vpop.xlane.xlu0 %96  ;;  %v100_v28 = vpop.xlane.xlu1 %99  ;;  %v269_v29 = vshra.s32 %v612_v31, 16  ;;  %v284_v37 = vshra.s32 %v615_v32, 16  ;;  %v208_v26 = vand.u32 65535, %v576_v9  ;;  %v238_v9 = vand.u32 65535, %v594_v19 }
  0xa9   : > { %vm125_vm12 = vcmp.eq.f32.partialorder %v512_v34, %v97_v33  ;;  %vm126_vm13 = vcmp.eq.f32.partialorder %v514_v35, %v100_v28  ;;  %v195_v33 = vcvt.s32.f32 %v193_v54  ;;  %v268_v19 = vand.u32 65535, %v612_v31 }
  0xaa   : > { %v141_v38 = vsel %vm125_vm12, %v538_v49, 29  ;;  %v142_v39 = vsel %vm126_vm13, %v538_v49, 29  ;;  %v627_v42 = vcvt.s32.f32 %v269_v29  ;;  %v637_v48 = vcvt.s32.f32 %v284_v37 }
  0xab   : > { %v630_v43 = vsel %vm64_vm0, %v141_v38, 2147483647  ;;  %v633_v46 = vsel %vm64_vm0, %v142_v39, 2147483647  ;;  %v210_v28 = vcvt.s32.f32 %v208_v26  ;;  %v225_v38 = vcvt.s32.f32 %v223_v0 }
  0xac   : > { %257 = vmin.xlane.f32.xlu1 %v619_v36  ;;  %272 = vmin.xlane.f32.xlu0 %v627_v42  ;;  %v103_v47 = vpop.xlane.xlu0 %102  ;;  %v106_v34 = vpop.xlane.xlu1 %105  ;;  %v299_v35 = vshra.s32 %v630_v43, 16  ;;  %v314_v50 = vshra.s32 %v633_v46, 16  ;;  %v240_v39 = vcvt.s32.f32 %v238_v9  ;;  %v283_v20 = vand.u32 65535, %v615_v32 }
  0xad   : > { %vm127_vm14 = vcmp.eq.f32.partialorder %v522_v40, %v103_v47  ;;  %vm128_vm15 = vcmp.eq.f32.partialorder %v524_v41, %v106_v34  ;;  %v298_v31 = vand.u32 65535, %v630_v43  ;;  %v313_v32 = vand.u32 65535, %v633_v46 }
  0xae   : > { %v143_v51 = vsel %vm127_vm14, %v538_v49, 29  ;;  %v144_v52 = vsel %vm128_vm15, %v538_v49, 29  ;;  %v645_v53 = vcvt.s32.f32 %v299_v35  ;;  %v655_v59 = vcvt.s32.f32 %v314_v50 }
  0xaf   : > { %v648_v56 = vsel %vm64_vm0, %v143_v51, 2147483647  ;;  %v651_v57 = vsel %vm64_vm0, %v144_v52, 2147483647  ;;  %v255_v35 = vcvt.s32.f32 %v253_v10  ;;  %v270_v50 = vcvt.s32.f32 %v268_v19 }
  0xb0   : > { %287 = vmin.xlane.f32.xlu1 %v637_v48  ;;  %302 = vmin.xlane.f32.xlu0 %v645_v53  ;;  %v109_v58 = vpop.xlane.xlu0 %108  ;;  %v112_v40 = vpop.xlane.xlu1 %111  ;;  %v329_v41 = vshra.s32 %v648_v56, 16  ;;  %v344_v60 = vshra.s32 %v651_v57, 16  ;;  %v328_v43 = vand.u32 65535, %v648_v56  ;;  %v343_v46 = vand.u32 65535, %v651_v57 }
  0xb1   : > { %vm129_vm1 = vcmp.eq.f32.partialorder %v530_v44, %v109_v58  ;;  %vm130_vm2 = vcmp.eq.f32.partialorder %v532_v45, %v112_v40  ;;  %v285_v58 = vcvt.s32.f32 %v283_v20  ;;  %v300_v40 = vcvt.s32.f32 %v298_v31 }
  0xb2   : > { %v145_v61 = vsel %vm129_vm1, %v538_v49, 29  ;;  %v146_v1 = vsel %vm130_vm2, %v538_v49, 29  ;;  %v663_v2 = vcvt.s32.f32 %v329_v41  ;;  %v673_v6 = vcvt.s32.f32 %v344_v60 }
  0xb3   : > { %v666_v4 = vsel %vm64_vm0, %v145_v61, 2147483647  ;;  %v669_v5 = vsel %vm64_vm0, %v146_v1, 2147483647  ;;  %v315_v61 = vcvt.s32.f32 %v313_v32  ;;  %v330_v1 = vcvt.s32.f32 %v328_v43 }
  0xb4   : > { %317 = vmin.xlane.f32.xlu1 %v655_v59  ;;  %332 = vmin.xlane.f32.xlu0 %v663_v2  ;;  %v359_v44 = vshra.s32 %v666_v4, 16  ;;  %v374_v45 = vshra.s32 %v669_v5, 16  ;;  %v358_v56 = vand.u32 65535, %v666_v4  ;;  %v345_v11 = vcvt.s32.f32 %v343_v46 }
  0xb5   : > { %v373_v57 = vand.u32 65535, %v669_v5 }
  0xb6   : > { %v677_v7 = vcvt.s32.f32 %v359_v44  ;;  %v681_v49 = vcvt.s32.f32 %v374_v45 }
  0xb7   : > { %v375_v15 = vcvt.s32.f32 %v373_v57 }
  0xb8   : > { %347 = vmin.xlane.f32.xlu1 %v673_v6  ;;  %362 = vmin.xlane.f32.xlu0 %v677_v7 }
  0xbc   : > { %377 = vmin.xlane.f32.xlu1 %v681_v49 }
 0x129   : > { %v685_v12 = vpop.xlane.xlu0 %152 }
 0x12a   : > { %vm154_vm0 = vcmp.eq.f32.partialorder %v556_v62, %v685_v12  ;;  %v159_v5 = vcvt.f32.s32 %v685_v12 }
 0x12b   : > { %v155_v17 = vsel %vm154_vm0, %v150_v14, inf  ;;  %v360_v14 = vcvt.s32.f32 %v358_v56  ;;  %vm388_vm0 = vcmask 7168  }
 0x12c   : > { %156 = vmin.xlane.f32.xlu0 %v155_v17 }
 0x12d   : > { %v691_v21 = vpop.xlane.xlu1 %167  ;;  %v693_v22 = vpop.xlane.xlu0 %182 }
 0x12e   : > { %vm169_vm3 = vcmp.eq.f32.partialorder %v573_v8, %v691_v21  ;;  %vm184_vm4 = vcmp.eq.f32.partialorder %v565_v3, %v693_v22 }
 0x12f   : > { %v170_v55 = vsel %vm169_vm3, %v165_v23, inf  ;;  %v185_v62 = vsel %vm184_vm4, %v180_v25, inf  ;;  %v160_v23 = vshll.u32 %v159_v5, 16 }
 0x130   : > { %171 = vmin.xlane.f32.xlu1 %v170_v55  ;;  %186 = vmin.xlane.f32.xlu0 %v185_v62 }
 0x131   : > { %v701_v63 = vpop.xlane.xlu1 %197  ;;  %v703_v27 = vpop.xlane.xlu0 %212 }
 0x132   : > { %vm199_vm5 = vcmp.eq.f32.partialorder %v583_v13, %v701_v63  ;;  %vm214_vm6 = vcmp.eq.f32.partialorder %v591_v18, %v703_v27  ;;  %v204_v26 = vcvt.f32.s32 %v701_v63 }
 0x133   : > { %v200_v3 = vsel %vm199_vm5, %v195_v33, inf  ;;  %v215_v8 = vsel %vm214_vm6, %v210_v28, inf }
 0x134   : > { %201 = vmin.xlane.f32.xlu1 %v200_v3  ;;  %216 = vmin.xlane.f32.xlu0 %v215_v8  ;;  %v205_v9 = vshll.u32 %v204_v26, 16 }
 0x135   : > { %v711_v29 = vpop.xlane.xlu1 %227  ;;  %v713_v37 = vpop.xlane.xlu0 %242 }
 0x136   : > { %vm229_vm7 = vcmp.eq.f32.partialorder %v601_v24, %v711_v29  ;;  %vm244_vm8 = vcmp.eq.f32.partialorder %v609_v30, %v713_v37  ;;  %v234_v3 = vcvt.f32.s32 %v711_v29 }
 0x137   : > { %v230_v13 = vsel %vm229_vm7, %v225_v38, inf  ;;  %v245_v18 = vsel %vm244_vm8, %v240_v39, inf  ;;  %v249_v39 = vcvt.f32.s32 %v713_v37 }
 0x138   : > { %231 = vmin.xlane.f32.xlu1 %v230_v13  ;;  %246 = vmin.xlane.f32.xlu0 %v245_v18  ;;  %v235_v18 = vshll.u32 %v234_v3, 16 }
 0x139   : > { %v721_v47 = vpop.xlane.xlu1 %257  ;;  %v723_v34 = vpop.xlane.xlu0 %272  ;;  %v250_v20 = vshll.u32 %v249_v39, 16 }
 0x13a   : > { %vm259_vm9 = vcmp.eq.f32.partialorder %v619_v36, %v721_v47  ;;  %vm274_vm10 = vcmp.eq.f32.partialorder %v627_v42, %v723_v34  ;;  %v279_v31 = vcvt.f32.s32 %v723_v34 }
 0x13b   : > { %v260_v24 = vsel %vm259_vm9, %v255_v35, inf  ;;  %v275_v30 = vsel %vm274_vm10, %v270_v50, inf  ;;  %v264_v35 = vcvt.f32.s32 %v721_v47 }
 0x13c   : > { %261 = vmin.xlane.f32.xlu1 %v260_v24  ;;  %276 = vmin.xlane.f32.xlu0 %v275_v30 }
 0x13d   : > { %v731_v51 = vpop.xlane.xlu1 %287  ;;  %v733_v52 = vpop.xlane.xlu0 %302 }
 0x13e   : > { %vm289_vm11 = vcmp.eq.f32.partialorder %v637_v48, %v731_v51  ;;  %vm304_vm12 = vcmp.eq.f32.partialorder %v645_v53, %v733_v52  ;;  %v294_v32 = vcvt.f32.s32 %v731_v51 }
 0x13f   : > { %v290_v36 = vsel %vm289_vm11, %v285_v58, inf  ;;  %v305_v42 = vsel %vm304_vm12, %v300_v40, inf  ;;  %v265_v40 = vshll.u32 %v264_v35, 16 }
 0x140   : > { %291 = vmin.xlane.f32.xlu1 %v290_v36  ;;  %306 = vmin.xlane.f32.xlu0 %v305_v42  ;;  %v280_v36 = vshll.u32 %v279_v31, 16  ;;  %v309_v42 = vcvt.f32.s32 %v733_v52  ;;  %v295_v56 = vshll.u32 %v294_v32, 16 }
 0x141   : > { %v741_v41 = vpop.xlane.xlu1 %317  ;;  %v743_v60 = vpop.xlane.xlu0 %332 }
 0x142   : > { %vm319_vm13 = vcmp.eq.f32.partialorder %v655_v59, %v741_v41  ;;  %vm334_vm14 = vcmp.eq.f32.partialorder %v663_v2, %v743_v60 }
 0x143   : > { %v320_v48 = vsel %vm319_vm13, %v315_v61, inf  ;;  %v335_v53 = vsel %vm334_vm14, %v330_v1, inf }
 0x144   : > { %321 = vmin.xlane.f32.xlu1 %v320_v48  ;;  %336 = vmin.xlane.f32.xlu0 %v335_v53  ;;  %v324_v48 = vcvt.f32.s32 %v741_v41 }
 0x145   : > { %v751_v44 = vpop.xlane.xlu1 %347  ;;  %v753_v45 = vpop.xlane.xlu0 %362 }
 0x146   : > { %vm349_vm15 = vcmp.eq.f32.partialorder %v673_v6, %v751_v44  ;;  %vm364_vm1 = vcmp.eq.f32.partialorder %v677_v7, %v753_v45  ;;  %v174_v6 = vcvt.f32.s32 %v691_v21  ;;  %v189_v7 = vcvt.f32.s32 %v693_v22 }
 0x147   : > { %v350_v59 = vsel %vm349_vm15, %v345_v11, inf  ;;  %v365_v2 = vsel %vm364_vm1, %v360_v14, inf  ;;  %v219_v22 = vcvt.f32.s32 %v703_v27  ;;  %v310_v11 = vshll.u32 %v309_v42, 16 }
 0x148   : > { %351 = vmin.xlane.f32.xlu1 %v350_v59  ;;  %366 = vmin.xlane.f32.xlu0 %v365_v2  ;;  %v175_v54 = vshll.u32 %v174_v6, 16  ;;  %v190_v55 = vshll.u32 %v189_v7, 16  ;;  %v339_v14 = vcvt.f32.s32 %v743_v60 }
 0x149   : > { %v760_v4 = vpop.xlane.xlu1 %377  ;;  %v220_v63 = vshll.u32 %v219_v22, 16 }
 0x14a   : > { %vm379_vm2 = vcmp.eq.f32.partialorder %v681_v49, %v760_v4  ;;  %v340_v6 = vshll.u32 %v339_v14, 16 }
 0x14b   : > { %v380_v16 = vsel %vm379_vm2, %v375_v15, inf  ;;  %v325_v15 = vshll.u32 %v324_v48, 16 }
 0x14c   : > { %381 = vmin.xlane.f32.xlu1 %v380_v16  ;;  %v354_v16 = vcvt.f32.s32 %v751_v44 }
 0x1b9   : > { %v157_v17 = vpop.xlane.xlu0 %156 }
 0x1ba   : > { %v158_v25 = vcvt.f32.s32 %v157_v17  ;;  %v369_v17 = vcvt.f32.s32 %v753_v45 }
 0x1bc   : > { %v161_v49 = vadd.s32 %v160_v23, %v158_v25  ;;  %v370_v26 = vshll.u32 %v369_v17, 16 }
 0x1bd   : > { %v172_v12 = vpop.xlane.xlu1 %171  ;;  %v187_v21 = vpop.xlane.xlu0 %186 }
 0x1be   : > { %389 = vst.msk [vmem:[%s772_s13] sm:$0xff] %vm388_vm0, %v161_v49  ;;  %v173_v62 = vcvt.f32.s32 %v172_v12  ;;  %v188_v33 = vcvt.f32.s32 %v187_v21  ;;  %v355_v49 = vshll.u32 %v354_v16, 16  ;;  %v384_v12 = vcvt.f32.s32 %v760_v4 }
 0x1c0   : > { %v176_v28 = vadd.s32 %v175_v54, %v173_v62  ;;  %v191_v0 = vadd.s32 %v190_v55, %v188_v33  ;;  %v385_v33 = vshll.u32 %v384_v12, 16 }
 0x1c1   : > { %v202_v8 = vpop.xlane.xlu1 %201  ;;  %v217_v38 = vpop.xlane.xlu0 %216 }
 0x1c2   : > { %390 = vst.msk [vmem:[%s772_s13 + $0x8] sm:$0xff] %vm388_vm0, %v176_v28  ;;  %391 = vst.msk [vmem:[%s772_s13 + $0x10] sm:$0xff] %vm388_vm0, %v191_v0  ;;  %v203_v27 = vcvt.f32.s32 %v202_v8  ;;  %v218_v10 = vcvt.f32.s32 %v217_v38 }
 0x1c4   : > { %v206_v19 = vadd.s32 %v205_v9, %v203_v27  ;;  %v221_v13 = vadd.s32 %v220_v63, %v218_v10 }
 0x1c5   : > { %v232_v50 = vpop.xlane.xlu1 %231  ;;  %v247_v29 = vpop.xlane.xlu0 %246 }
 0x1c6   : > { %392 = vst.msk [vmem:[%s772_s13 + $0x18] sm:$0xff] %vm388_vm0, %v206_v19  ;;  %393 = vst.msk [vmem:[%s772_s13 + $0x20] sm:$0xff] %vm388_vm0, %v221_v13  ;;  %v233_v37 = vcvt.f32.s32 %v232_v50  ;;  %v248_v24 = vcvt.f32.s32 %v247_v29 }
 0x1c8   : > { %v236_v30 = vadd.s32 %v235_v18, %v233_v37  ;;  %v251_v58 = vadd.s32 %v250_v20, %v248_v24 }
 0x1c9   : > { %v262_v43 = vpop.xlane.xlu1 %261  ;;  %v277_v47 = vpop.xlane.xlu0 %276 }
 0x1ca   : > { %394 = vst.msk [vmem:[%s772_s13 + $0x28] sm:$0xff] %vm388_vm0, %v236_v30  ;;  %395 = vst.msk [vmem:[%s772_s13 + $0x30] sm:$0xff] %vm388_vm0, %v251_v58  ;;  %v263_v34 = vcvt.f32.s32 %v262_v43  ;;  %v278_v61 = vcvt.f32.s32 %v277_v47 }
 0x1cc   : > { %v266_v1 = vadd.s32 %v265_v40, %v263_v34  ;;  %v281_v46 = vadd.s32 %v280_v36, %v278_v61 }
 0x1cd   : > { %v292_v53 = vpop.xlane.xlu1 %291  ;;  %v307_v51 = vpop.xlane.xlu0 %306 }
 0x1ce   : > { %396 = vst.msk [vmem:[%s772_s13 + $0x38] sm:$0xff] %vm388_vm0, %v266_v1  ;;  %397 = vst.msk [vmem:[%s772_s13 + $0x40] sm:$0xff] %vm388_vm0, %v281_v46  ;;  %v293_v52 = vcvt.f32.s32 %v292_v53  ;;  %v308_v57 = vcvt.f32.s32 %v307_v51 }
 0x1d0   : > { %v296_v59 = vadd.s32 %v295_v56, %v293_v52  ;;  %v311_v2 = vadd.s32 %v310_v11, %v308_v57 }
 0x1d1   : > { %v322_v41 = vpop.xlane.xlu1 %321  ;;  %v337_v5 = vpop.xlane.xlu0 %336 }
 0x1d2   : > { %398 = vst.msk [vmem:[%s772_s13 + $0x48] sm:$0xff] %vm388_vm0, %v296_v59  ;;  %399 = vst.msk [vmem:[%s772_s13 + $0x50] sm:$0xff] %vm388_vm0, %v311_v2  ;;  %v323_v60 = vcvt.f32.s32 %v322_v41  ;;  %v338_v23 = vcvt.f32.s32 %v337_v5 }
 0x1d4   : > { %v326_v7 = vadd.s32 %v325_v15, %v323_v60  ;;  %v341_v25 = vadd.s32 %v340_v6, %v338_v23 }
 0x1d5   : > { %v352_v54 = vpop.xlane.xlu1 %351  ;;  %v367_v44 = vpop.xlane.xlu0 %366 }
 0x1d6   : > { %400 = vst.msk [vmem:[%s772_s13 + $0x58] sm:$0xff] %vm388_vm0, %v326_v7  ;;  %401 = vst.msk [vmem:[%s772_s13 + $0x60] sm:$0xff] %vm388_vm0, %v341_v25  ;;  %v353_v45 = vcvt.f32.s32 %v352_v54  ;;  %v368_v21 = vcvt.f32.s32 %v367_v44 }
 0x1d8   : > { %v356_v55 = vadd.s32 %v355_v49, %v353_v45  ;;  %v371_v22 = vadd.s32 %v370_v26, %v368_v21  ;;  %12 = sbr.rel (!%p10_p0) target bundleno = 1 (0x1), region = 33 }
 0x1d9   : > { %v382_v62 = vpop.xlane.xlu1 %381 }
 0x1da   : > { %402 = vst.msk [vmem:[%s772_s13 + $0x68] sm:$0xff] %vm388_vm0, %v356_v55  ;;  %403 = vst.msk [vmem:[%s772_s13 + $0x70] sm:$0xff] %vm388_vm0, %v371_v22  ;;  %v383_v28 = vcvt.f32.s32 %v382_v62 }
 0x1dc   : > { %v386_v0 = vadd.s32 %v385_v33, %v383_v28 }
 0x1de   : > { %404 = vst.msk [vmem:[%s772_s13 + $0x78] sm:$0xff] %vm388_vm0, %v386_v0 }

</bundles_post_ra>
